<compile_context>
chip_gen: v6e
topology: v6e:2x2x1
jax: 0.10.0
libtpu: 0.0.40
codegen_flags: <defaults>
</compile_context>

<pallas_src>
import functools

import jax
import jax.numpy as jnp
from jax import lax
from jax.experimental import pallas as pl
from jax.experimental.pallas import tpu as pltpu

_LANES = 128
_SUBLANES = 8
_CHUNK_ROWS = 128                      # per-chunk accumulator = 16 f32 vregs
_BYTES_PER_BUFFER = 2 * 1024 * 1024    # ~2 MiB per input per pipeline buffer


def _cdiv(a, b):
    return (a + b - 1) // b


def _round_up(x, m):
    return _cdiv(x, m) * m


def _tensorcores_per_chip():
    # v7x exposes 2 TensorCores per chip; v5e/v6e expose 1.
    try:
        kind = (jax.devices()[0].device_kind or "").lower()
    except Exception:
        return 1
    if "v7" in kind or "7x" in kind:
        return 2
    return 1


def _mse_kernel(p_ref, r_ref, o_ref, *, total_rows, row_tile, chunk_rows,
                blocks_per_shard, needs_mask):
    s = pl.program_id(0)   # shard (TensorCore) axis
    i = pl.program_id(1)   # row-block reduction axis

    # Output block index is constant across i, so it stays VMEM-resident and
    # acts as the accumulator; zero it at the start of each shard's sweep.
    @pl.when(i == 0)
    def _():
        o_ref[...] = jnp.zeros_like(o_ref)

    n_chunks = row_tile // chunk_rows
    row_start = (s * blocks_per_shard + i) * row_tile

    def accumulate(masked):
        # Statically-unrolled chunk loop: loads stay at native dtype, upcast
        # in-register, squared differences fold straight into a vreg-resident
        # (chunk_rows, 128) accumulator — no big VMEM temporaries.
        acc = jnp.zeros((chunk_rows, _LANES), jnp.float32)
        for c in range(n_chunks):
            off = c * chunk_rows
            d = (p_ref[off:off + chunk_rows, :].astype(jnp.float32)
                 - r_ref[off:off + chunk_rows, :].astype(jnp.float32))
            sq = d * d
            if masked:
                rid = lax.broadcasted_iota(jnp.int32, sq.shape, 0) + (row_start + off)
                sq = jnp.where(rid < total_rows, sq, 0.0)
            acc = acc + sq
        o_ref[...] += acc

    if needs_mask:
        # Only the ragged last block / clamped duplicate blocks pay the mask;
        # every in-range block takes the unmasked fast path.
        overhang = row_start + row_tile > total_rows

        @pl.when(jnp.logical_not(overhang))
        def _():
            accumulate(False)

        @pl.when(overhang)
        def _():
            accumulate(True)
    else:
        accumulate(False)


def mse_loss(pred, real):
    assert pred.shape == real.shape, "mse_loss expects matching shapes"
    n_elements = int(pred.size)
    assert n_elements > 0

    p = pred.reshape(-1)
    r = real.reshape(-1)

    # Lane alignment: the (rows, 128) reshape needs n % 128 == 0. Pad only in
    # that case; pad zeros contribute 0 and we divide by the true count.
    rows = _cdiv(n_elements, _LANES)
    lane_padded = rows * _LANES
    if lane_padded != n_elements:
        p = jnp.pad(p, (0, lane_padded - n_elements))
        r = jnp.pad(r, (0, lane_padded - n_elements))
    p2 = p.reshape(rows, _LANES)
    r2 = r.reshape(rows, _LANES)

    # Dtype-aware tile: ~2 MiB per input per pipeline buffer.
    itemsize = max(p2.dtype.itemsize, r2.dtype.itemsize)
    budget_rows = max(
        _CHUNK_ROWS,
        (_BYTES_PER_BUFFER // (_LANES * itemsize)) // _CHUNK_ROWS * _CHUNK_ROWS,
    )
    row_tile = min(budget_rows, _round_up(rows, _SUBLANES))
    chunk_rows = _CHUNK_ROWS if (row_tile % _CHUNK_ROWS == 0) else row_tile

    num_blocks = _cdiv(rows, row_tile)
    num_cores = _tensorcores_per_chip()
    num_shards = num_cores if (num_cores > 1 and num_blocks >= num_cores) else 1
    blocks_per_shard = _cdiv(num_blocks, num_shards)
    # Mask code is compiled in only if some (shard, block) step can touch rows
    # beyond the true extent (ragged tail or clamped duplicate block).
    needs_mask = (num_shards * blocks_per_shard * row_tile) != rows

    def in_map(s, i):
        # Clamp so duplicated trailing blocks never index out of range; their
        # contribution is zeroed by the in-kernel overhang mask.
        return (jnp.minimum(s * blocks_per_shard + i, num_blocks - 1), 0)

    kernel = functools.partial(
        _mse_kernel,
        total_rows=rows,
        row_tile=row_tile,
        chunk_rows=chunk_rows,
        blocks_per_shard=blocks_per_shard,
        needs_mask=needs_mask,
    )

    arb = getattr(pltpu, "ARBITRARY", "arbitrary")
    if num_shards > 1:
        shard_sem = getattr(pltpu, "CORE_PARALLEL",
                            getattr(pltpu, "PARALLEL", "parallel"))
        semantics = (shard_sem, arb)
    else:
        semantics = (arb, arb)

    cost = pl.CostEstimate(
        flops=3 * n_elements,
        transcendentals=0,
        bytes_accessed=int(p2.nbytes) + int(r2.nbytes)
        + num_shards * chunk_rows * _LANES * 4,
    )

    partials = pl.pallas_call(
        kernel,
        out_shape=jax.ShapeDtypeStruct((num_shards, chunk_rows, _LANES), jnp.float32),
        grid_spec=pltpu.PrefetchScalarGridSpec(
            num_scalar_prefetch=0,
            grid=(num_shards, blocks_per_shard),
            in_specs=[
                pl.BlockSpec((row_tile, _LANES), in_map),
                pl.BlockSpec((row_tile, _LANES), in_map),
            ],
            out_specs=pl.BlockSpec((None, chunk_rows, _LANES), lambda s, i: (s, 0, 0)),
        ),
        compiler_params=pltpu.CompilerParams(dimension_semantics=semantics),
        cost_estimate=cost,
    )(p2, r2)

    # Single cheap cross-lane reduce over the tiny partial-sum slab + mean.
    return jnp.sum(partials) * (1.0 / float(n_elements))


if __name__ == "__main__":
    key = jax.random.PRNGKey(0)
    kp, kr = jax.random.split(key)

    # Primary check at the NCHW shape implied by the module.
    shape = (2, 4, 16, 16)
    pred = jax.random.normal(kp, shape, dtype=jnp.float32)
    real = jax.random.normal(kr, shape, dtype=jnp.float32)

    loss = jax.block_until_ready(mse_loss(pred, real))
    ref = jnp.mean((pred - real) ** 2)
    assert jnp.allclose(loss, ref, rtol=1e-5, atol=1e-6), (loss, ref)

    # Extra sanity checks: ragged-tail overhang mask, multi-block reduction,
    # and (on v7x) the clamped 2-shard path.
    for idx, extra_shape in enumerate([(3, 5, 17, 13), (1176516,)]):
        k1, k2 = jax.random.split(jax.random.fold_in(key, idx + 1))
        a = jax.random.normal(k1, extra_shape, dtype=jnp.float32)
        b = jax.random.normal(k2, extra_shape, dtype=jnp.float32)
        got = jax.block_until_ready(mse_loss(a, b))
        want = jnp.mean((a - b) ** 2)
        assert jnp.allclose(got, want, rtol=1e-5, atol=1e-6), (extra_shape, got, want)

    # bf16 path: dtype-aware tiling + in-register upcast.
    a = jax.random.normal(jax.random.fold_in(key, 7), (4, 3, 32, 32), dtype=jnp.bfloat16)
    b = jax.random.normal(jax.random.fold_in(key, 8), (4, 3, 32, 32), dtype=jnp.bfloat16)
    got = jax.block_until_ready(mse_loss(a, b))
    want = jnp.mean((a.astype(jnp.float32) - b.astype(jnp.float32)) ** 2)
    assert jnp.allclose(got, want, rtol=2e-2, atol=2e-3), (got, want)

    print("KERNEL_OK")
</pallas_src>

<mosaic_0001>
module attributes {stable_mosaic.version = 11 : i64} {
  func.func @_mse_kernel(%arg0: i32, %arg1: i32, %arg2: memref<16x128xf32, #tpu.memory_space<vmem>>, %arg3: memref<16x128xf32, #tpu.memory_space<vmem>>, %arg4: memref<1x16x128xf32, #tpu.memory_space<vmem>>) attributes {dimension_semantics = [#tpu.dimension_semantics<arbitrary>, #tpu.dimension_semantics<arbitrary>], iteration_bounds = array<i64: 1, 1>, scalar_prefetch = 0 : i64, scratch_operands = 0 : i64, tpu.core_type = #tpu.core_type<tc>, window_params = [{transform_indices = @transform_0, window_bounds = array<i64: 16, 128>}, {transform_indices = @transform_1, window_bounds = array<i64: 16, 128>}, {transform_indices = @transform_2, window_bounds = array<i64: 1, 16, 128>}]} {
    %c0_i32 = arith.constant 0 : i32
    %0 = arith.cmpi eq, %arg1, %c0_i32 : i32
    %1 = arith.extui %0 : i1 to i32
    %c0_i32_0 = arith.constant 0 : i32
    %2 = arith.cmpi ne, %1, %c0_i32_0 : i32
    scf.if %2 {
      %cst_10 = arith.constant 0.000000e+00 : f32
      %15 = vector.broadcast %cst_10 : f32 to vector<16x128xf32>
      %c0_11 = arith.constant 0 : index
      %c0_12 = arith.constant 0 : index
      %c0_13 = arith.constant 0 : index
      %16 = vector.load %arg4[%c0_11, %c0_12, %c0_13] : memref<1x16x128xf32, #tpu.memory_space<vmem>>, vector<1x16x128xf32>
      %17 = vector.shape_cast %16 : vector<1x16x128xf32> to vector<16x128xf32>
      %18 = vector.shape_cast %15 : vector<16x128xf32> to vector<1x16x128xf32>
      tpu.vector_store %arg4[%c0_11, %c0_12, %c0_13], %18 {strides = array<i32>} : memref<1x16x128xf32, #tpu.memory_space<vmem>>, vector<1x16x128xf32>,
    } else {
    }
    %cst = arith.constant 0.000000e+00 : f32
    %3 = vector.broadcast %cst : f32 to vector<16x128xf32>
    %c0 = arith.constant 0 : index
    %c0_1 = arith.constant 0 : index
    %4 = vector.load %arg2[%c0, %c0_1] : memref<16x128xf32, #tpu.memory_space<vmem>>, vector<16x128xf32>
    %c0_2 = arith.constant 0 : index
    %c0_3 = arith.constant 0 : index
    %5 = vector.load %arg3[%c0_2, %c0_3] : memref<16x128xf32, #tpu.memory_space<vmem>>, vector<16x128xf32>
    %6 = arith.subf %4, %5 : vector<16x128xf32>
    %7 = arith.mulf %6, %6 : vector<16x128xf32>
    %8 = arith.addf %3, %7 : vector<16x128xf32>
    %c0_4 = arith.constant 0 : index
    %c0_5 = arith.constant 0 : index
    %c0_6 = arith.constant 0 : index
    %9 = vector.load %arg4[%c0_4, %c0_5, %c0_6] : memref<1x16x128xf32, #tpu.memory_space<vmem>>, vector<1x16x128xf32>
    %10 = vector.shape_cast %9 : vector<1x16x128xf32> to vector<16x128xf32>
    %11 = arith.addf %10, %8 : vector<16x128xf32>
    %c0_7 = arith.constant 0 : index
    %c0_8 = arith.constant 0 : index
    %c0_9 = arith.constant 0 : index
    %12 = vector.load %arg4[%c0_7, %c0_8, %c0_9] : memref<1x16x128xf32, #tpu.memory_space<vmem>>, vector<1x16x128xf32>
    %13 = vector.shape_cast %12 : vector<1x16x128xf32> to vector<16x128xf32>
    %14 = vector.shape_cast %11 : vector<16x128xf32> to vector<1x16x128xf32>
    tpu.vector_store %arg4[%c0_7, %c0_8, %c0_9], %14 {strides = array<i32>} : memref<1x16x128xf32, #tpu.memory_space<vmem>>, vector<1x16x128xf32>,
    return
  }
  func.func @transform_0(%arg0: i32, %arg1: i32) -> (i32, i32) {
    %c1_i32 = arith.constant 1 : i32
    %0 = arith.muli %arg0, %c1_i32 : i32
    %1 = arith.addi %0, %arg1 : i32
    %c0_i32 = arith.constant 0 : i32
    %2 = arith.minsi %1, %c0_i32 : i32
    %c0_i32_0 = arith.constant 0 : i32
    %c0_i32_1 = arith.constant 0 : i32
    return %2, %c0_i32_0 : i32, i32
  }
  func.func @transform_1(%arg0: i32, %arg1: i32) -> (i32, i32) {
    %c1_i32 = arith.constant 1 : i32
    %0 = arith.muli %arg0, %c1_i32 : i32
    %1 = arith.addi %0, %arg1 : i32
    %c0_i32 = arith.constant 0 : i32
    %2 = arith.minsi %1, %c0_i32 : i32
    %c0_i32_0 = arith.constant 0 : i32
    %c0_i32_1 = arith.constant 0 : i32
    return %2, %c0_i32_0 : i32, i32
  }
  func.func @transform_2(%arg0: i32, %arg1: i32) -> (i32, i32, i32) {
    %c0_i32 = arith.constant 0 : i32
    %c0_i32_0 = arith.constant 0 : i32
    %c0_i32_1 = arith.constant 0 : i32
    return %arg0, %c0_i32, %c0_i32_0 : i32, i32, i32
  }
}

</mosaic_0001>

<bundles_post_ra>
// kernel: tpu_custom_call.1
= control target key start
LH: loop header
LB: loop body
LE: loop exit
PB: predicated region body
PF: predicated region fallthrough
CT: control target
= control target key end

     0   :  { %7 = vsyncpa [#allocation3], 0  ;;  %s214_s0 = inlined_call_operand.hbm [shape: f32[16,128], index: 0, kind: input, shape index: {}]   ;;  %s215_s1 = inlined_call_operand.hbm [shape: f32[16,128], index: 1, kind: input, shape index: {}]   ;;  %s216_s2 = inlined_call_operand.hbm [shape: f32[1,16,128], index: 2, kind: output, shape index: {}]  }
   0x1   :  { %8 = vsyncpa [#allocation6], 0 }
   0x2   :  { %9 = vsyncpa [#allocation4], 0  ;;  %s176_s9 = smov [#allocation2]  }
   0x3   :  { %s21_s10 = sshll.u32 %s176_s9, 4  ;;  %s22_s10 = int_to_ptr.vmem [resolvable:$true] %s21_s10 }
   0x4   :  { %s118_s11 = scalar_lea.vmem %s22_s10, 256  ;;  %p123_p1 = scmp.lt.s32.totalorder %s22_s10, %s22_s10 }
   0x5   :  { %p119_p0 = scmp.ne.s32.totalorder %s22_s10, %s118_s11  ;;  %p124_p2 = scmp.lt.s32.totalorder %s118_s11, %s118_s11 }
   0x7   :  { %p125_p3 = por %p124_p2, %p123_p1 }
   0x9   :  { %p126_p4 = pnand %p125_p3, %p119_p0 }
   0xb   :  { %129 = shalt.err (!%p126_p4)
}
   0xc   :  { %s177_s12 = smov 128   ;;  %s178_s13 = smov 8  }
   0xd   :  { %27 = dma.hbm_to_vmem [thread:$0]  %s214_s0, 256, %s22_s10, [#allocation3], %s177_s12, %s177_s12, %s178_s13  }
   0xe   :  { %s179_s16 = smov [#allocation5]  }
   0xf   :  { %s39_s17 = sshll.u32 %s179_s16, 4  ;;  %s40_s17 = int_to_ptr.vmem [resolvable:$true] %s39_s17 }
  0x10   :  { %s138_s18 = scalar_lea.vmem %s40_s17, 256  ;;  %p143_p6 = scmp.lt.s32.totalorder %s40_s17, %s40_s17 }
  0x11   :  { %p139_p5 = scmp.ne.s32.totalorder %s40_s17, %s138_s18  ;;  %p144_p7 = scmp.lt.s32.totalorder %s138_s18, %s138_s18 }
  0x13   :  { %p145_p8 = por %p144_p7, %p143_p6 }
  0x15   :  { %p146_p9 = pnand %p145_p8, %p139_p5 }
  0x17   :  { %149 = shalt.err (!%p146_p9)
}
  0x18   :  { %45 = dma.hbm_to_vmem [thread:$0]  %s215_s1, 256, %s40_s17, [#allocation6], %s177_s12, %s177_s12, %s178_s13  }
  0x19   :  { %170 = dma.done.wait [#allocation3], 256  }
  0x1a   :  { %171 = vsyncadd [#allocation3], 4294967040 }
  0x1b   :  { %172 = dma.done.wait [#allocation6], 256  }
  0x1c   :  { %173 = vsyncadd [#allocation6], 4294967040  ;;  %v66_v0 = vld [vmem:[#allocation2] sm:$0xff]  ;;  %v68_v1 = vld [vmem:[#allocation5] sm:$0xff]  ;;  %s180_s0 = smov [#allocation7]  }
  0x1d   :  { %v67_v2 = vld [vmem:[#allocation2 + $0x8] sm:$0xff]  ;;  %v70_v3 = vsub.f32 %v66_v0, %v68_v1  ;;  %v69_v4 = vld [vmem:[#allocation5 + $0x8] sm:$0xff]  ;;  %s87_s21 = sshll.u32 %s180_s0, 4  ;;  %s88_s21 = int_to_ptr.vmem [resolvable:$true] %s87_s21 }
  0x1e   :  { %v71_v5 = vsub.f32 %v67_v2, %v69_v4  ;;  %s150_s22 = scalar_lea.vmem %s88_s21, 256  ;;  %p155_p11 = scmp.lt.s32.totalorder %s88_s21, %s88_s21 }
  0x1f   :  { %v72_v6 = vmul.f32 %v70_v3, %v70_v3  ;;  %p151_p10 = scmp.ne.s32.totalorder %s88_s21, %s150_s22  ;;  %p156_p12 = scmp.lt.s32.totalorder %s150_s22, %s150_s22 }
  0x20   :  { %v73_v7 = vmul.f32 %v71_v5, %v71_v5 }
  0x21   :  { %80 = vst [vmem:[#allocation7] sm:$0xff] %v72_v6  ;;  %p157_p13 = por %p156_p12, %p155_p11 }
  0x22   :  { %81 = vst [vmem:[#allocation7 + $0x8] sm:$0xff] %v73_v7 }
  0x23   :  { %p158_p0 = pnand %p157_p13, %p151_p10 }
  0x25   :  { %161 = shalt.err (!%p158_p0)
}
  0x26   :  { %93 = dma.vmem_to_hbm [thread:$0]  %s88_s21, 256, %s216_s2, [#allocation4], %s177_s12, %s177_s12, %s178_s13  }
  0x27   :  { %174 = dma.done.wait [#allocation4], 256  }
  0x28   :  { %175 = vsyncadd [#allocation4], 4294967040 }
  0x29   :  { %97 = vsyncpa [#allocation3], 1 }
  0x2a   :  { %98 = vsyncpa [#allocation6], 1 }
  0x2b   :  { %99 = vsyncpa [#allocation4], 1 }

</bundles_post_ra>
